<compile_context>
chip_gen: v7x
topology: tpu7x:2x2x1
jax: 0.10.0
libtpu: 0.0.40
codegen_flags: <defaults>
</compile_context>

<pallas_src>
import jax
import jax.numpy as jnp
from jax import lax
from jax.experimental import pallas as pl
from jax.experimental.pallas import tpu as pltpu

# ---- static config -------------------------------------------------------
N, H, W = 2, 16, 16
HW = H * W                      # 256 (per-image lane extent, multiple of 128)
NHW = N * HW                    # 512 (batch fused on the lane axis)
CIN, COUT = 4, 4
K, STRIDE = 3, 1
PAD = K // 2
EXPAND = 2
HID = int(round(CIN * EXPAND))  # 8
SE_RED = 4
SE_HID = HID // SE_RED          # 2
LS_INIT = 1e-5
BN_EPS = 1e-5

KKC = K * K * CIN               # 36 : im2col contraction dim (all 9 taps on sublanes)
LPAD = 128                      # lane halo (>= max shift 17, kept 128-aligned)
XPW = NHW + 2 * LPAD            # 768 : padded staging width

# lane offsets inside the single packed (HID, 128) parameter tile
_P_WALL = 0                     # [:, 0:36]       expand conv w/ BN1 scale folded (HID, KKC)
_P_W2F = _P_WALL + KKC          # [0:COUT, 36:44] 1x1 proj w/ BN2*LayerScale folded (COUT, HID)
_P_WSE1 = _P_W2F + HID          # [:, 44:46]      SE fc1 (HID, SE_HID)
_P_WSE2T = _P_WSE1 + SE_HID     # [:, 46:48]      SE fc2 transposed (HID, SE_HID)
_P_B1 = _P_WSE2T + SE_HID       # [:, 48]         BN1 bias
_P_B2 = _P_B1 + 1               # [0:COUT, 49]    BN2 bias * LayerScale
_P_LS = _P_B2 + 1               # [0:COUT, 50]    LayerScale
P_LANES = 128


# ---- Pallas kernel: whole batch, single invocation ------------------------
def _fib_kernel(x_ref, p_ref, o_ref, xpad_ref):
    # --- unpack the single packed-parameter tile (one tiny DMA for all weights) ---
    wall = p_ref[:, _P_WALL:_P_WALL + KKC]               # (HID, KKC)
    w2f = p_ref[0:COUT, _P_W2F:_P_W2F + HID]              # (COUT, HID)
    wse1 = p_ref[:, _P_WSE1:_P_WSE1 + SE_HID]             # (HID, SE_HID)
    wse2t = p_ref[:, _P_WSE2T:_P_WSE2T + SE_HID]          # (HID, SE_HID)
    b1c = p_ref[:, _P_B1:_P_B1 + 1]                       # (HID, 1)
    b2c = p_ref[0:COUT, _P_B2:_P_B2 + 1]                  # (COUT, 1)
    lsc = p_ref[0:COUT, _P_LS:_P_LS + 1]                  # (COUT, 1)

    # --- boundary masks generated in-kernel (no DMA); H, W are powers of two ---
    lane = lax.broadcasted_iota(jnp.int32, (1, NHW), 1)
    w_idx = lane & (W - 1)                                 # lane % W
    h_idx = (lane >> 4) & (H - 1)                          # (lane // W) % H
    col_l = jnp.where(w_idx >= 1, 1.0, 0.0)                # valid columns for dw = -1
    col_r = jnp.where(w_idx <= W - 2, 1.0, 0.0)            # valid columns for dw = +1
    row_t = jnp.where(h_idx >= 1, 1.0, 0.0)                # valid rows for dh = -1
    row_b = jnp.where(h_idx <= H - 2, 1.0, 0.0)            # valid rows for dh = +1
    img0 = jnp.where(lane < HW, 1.0, 0.0)                  # image-0 lanes

    # --- stage input into a zero-haloed scratch, batch fused on the lane axis ---
    x0 = x_ref[0]                                          # (CIN, HW)
    x1 = x_ref[1]                                          # (CIN, HW)
    xpad_ref[:, 0:LPAD] = jnp.zeros((CIN, LPAD), jnp.float32)
    xpad_ref[:, LPAD + NHW:XPW] = jnp.zeros((CIN, LPAD), jnp.float32)
    xpad_ref[:, LPAD:LPAD + HW] = x0
    xpad_ref[:, LPAD + HW:LPAD + NHW] = x1

    # --- input-side im2col: 9 shifted+masked copies of x stacked on sublanes ---
    pieces = []
    for kh in range(K):
        for kw in range(K):
            dh, dw = kh - PAD, kw - PAD
            s = dh * W + dw
            win = xpad_ref[:, LPAD + s:LPAD + s + NHW]     # (CIN, NHW) shifted window
            m = None
            if dh == -1:
                m = row_t
            elif dh == 1:
                m = row_b
            if dw == -1:
                m = col_l if m is None else m * col_l
            elif dw == 1:
                m = col_r if m is None else m * col_r
            pieces.append(win if m is None else win * m)
    xcol = jnp.concatenate(pieces, axis=0)                 # (KKC, NHW)

    # --- 3x3 expand conv (+BN1 scale folded) as ONE matmul: taps summed in the MXU ---
    y = jnp.dot(wall, xcol, preferred_element_type=jnp.float32)   # (HID, NHW)
    y = y + b1c
    y = y * jnp.clip(y + 3.0, 0.0, 6.0) * (1.0 / 6.0)             # HSwish

    # --- SE (per image): global avg pool -> FC -> ReLU -> FC -> Sigmoid -> scale ---
    se = []
    for n in range(N):                                     # N = 2, unrolled
        yl = y[:, n * HW:(n + 1) * HW]                     # lane-tile-aligned slice
        pooled = jnp.mean(yl, axis=1, keepdims=True)                               # (HID, 1)
        se_h = jnp.maximum(jnp.sum(wse1 * pooled, axis=0, keepdims=True), 0.0)     # (1, SE_HID)
        se.append(jax.nn.sigmoid(jnp.sum(wse2t * se_h, axis=1, keepdims=True)))    # (HID, 1)
    se_full = se[0] * img0 + se[1] * (1.0 - img0)          # (HID, NHW)
    y = y * se_full

    # --- 1x1 projection (BN2 scale * LayerScale folded) + bias ---
    out = jnp.dot(w2f, y, preferred_element_type=jnp.float32)     # (COUT, NHW)
    out = out + b2c

    # --- scaled residual: LayerScale applied AFTER the residual add (as in the module) ---
    o_ref[0] = (out[:, 0:HW] + lsc * x0).astype(o_ref.dtype)
    o_ref[1] = (out[:, HW:NHW] + lsc * x1).astype(o_ref.dtype)


@jax.jit
def fused_inverted_bottleneck(x_nchw, params):
    """x_nchw: (N, CIN, H, W) float32 -> (N, COUT, H, W) float32."""
    w1, s1, b1, wse1, wse2, w2, s2, b2, ls = params

    # fold BN1 scale into the expand conv weight, laid out as (HID, K*K*CIN) im2col weights
    wall = jnp.transpose(w1, (3, 0, 1, 2)).reshape(HID, KKC) * s1.reshape(HID, 1)
    # fold BN2 scale and LayerScale into the 1x1 projection
    w2f = jnp.transpose(w2) * (s2 * ls).reshape(COUT, 1)          # (COUT, HID)

    # pack ALL parameters into one (HID, 128) tile -> a single small DMA descriptor
    P = jnp.zeros((HID, P_LANES), jnp.float32)
    P = P.at[:, _P_WALL:_P_WALL + KKC].set(wall)
    P = P.at[0:COUT, _P_W2F:_P_W2F + HID].set(w2f)
    P = P.at[:, _P_WSE1:_P_WSE1 + SE_HID].set(wse1)
    P = P.at[:, _P_WSE2T:_P_WSE2T + SE_HID].set(jnp.transpose(wse2))
    P = P.at[:, _P_B1].set(b1)
    P = P.at[0:COUT, _P_B2].set(b2 * ls)
    P = P.at[0:COUT, _P_LS].set(ls)

    # native NCHW flattened to (N, C, H*W): channels on sublanes, spatial lane-dense;
    # no wrapper transposes (batch fusion onto the lane axis happens inside the kernel).
    x2 = x_nchw.reshape(N, CIN, HW)

    # TODO(synk): at larger N or H*W, add grid=(num_tiles,) with
    # dimension_semantics=("parallel",) so v7x can split work across both TensorCores;
    # at this shape per-image work is below the ~0.35us/step grid overhead, so keep
    # the single invocation.
    out = pl.pallas_call(
        _fib_kernel,
        out_shape=jax.ShapeDtypeStruct((N, COUT, HW), jnp.float32),
        in_specs=[pl.BlockSpec(memory_space=pltpu.MemorySpace.VMEM),
                  pl.BlockSpec(memory_space=pltpu.MemorySpace.VMEM)],
        out_specs=pl.BlockSpec(memory_space=pltpu.MemorySpace.VMEM),
        scratch_shapes=[pltpu.VMEM((CIN, XPW), jnp.float32)],
    )(x2, P)

    return out.reshape(N, COUT, H, W)


# ---- pure-JAX reference (mirrors the PyTorch forward) ----------------------
def reference_forward(x_nchw, params):
    w1, s1, b1, wse1, wse2, w2, s2, b2, ls = params
    w1_oihw = jnp.transpose(w1, (3, 2, 0, 1))                     # (HID, CIN, K, K)
    y = lax.conv_general_dilated(
        x_nchw, w1_oihw, window_strides=(STRIDE, STRIDE),
        padding=((PAD, PAD), (PAD, PAD)),
        dimension_numbers=("NCHW", "OIHW", "NCHW"))
    y = y * s1.reshape(1, -1, 1, 1) + b1.reshape(1, -1, 1, 1)
    y = y * jnp.clip(y + 3.0, 0.0, 6.0) / 6.0                     # HSwish
    pooled = jnp.mean(y, axis=(2, 3))                             # (N, HID)
    se = jnp.maximum(pooled @ wse1.reshape(HID, SE_HID), 0.0)
    se = jax.nn.sigmoid(se @ wse2.reshape(SE_HID, HID))
    y = y * se[:, :, None, None]
    out = jnp.einsum("nchw,cd->ndhw", y, w2.reshape(HID, COUT))
    out = out * s2.reshape(1, -1, 1, 1) + b2.reshape(1, -1, 1, 1)
    out = out + x_nchw                                            # residual
    out = out * ls.reshape(1, -1, 1, 1)                           # LayerScale (after residual)
    return out


def make_params(key):
    ks = jax.random.split(key, 12)
    w1 = 0.1 * jax.random.normal(ks[0], (K, K, CIN, HID), jnp.float32)

    g1 = 1.0 + 0.1 * jax.random.normal(ks[1], (HID,), jnp.float32)
    be1 = 0.1 * jax.random.normal(ks[2], (HID,), jnp.float32)
    mu1 = 0.1 * jax.random.normal(ks[3], (HID,), jnp.float32)
    v1 = 0.5 + jnp.abs(jax.random.normal(ks[4], (HID,), jnp.float32))
    s1 = g1 / jnp.sqrt(v1 + BN_EPS)
    b1 = be1 - mu1 * s1

    wse1 = 0.3 * jax.random.normal(ks[5], (HID, SE_HID), jnp.float32)
    wse2 = 0.3 * jax.random.normal(ks[6], (SE_HID, HID), jnp.float32)

    w2 = 0.1 * jax.random.normal(ks[7], (HID, COUT), jnp.float32)

    g2 = 1.0 + 0.1 * jax.random.normal(ks[8], (COUT,), jnp.float32)
    be2 = 0.1 * jax.random.normal(ks[9], (COUT,), jnp.float32)
    mu2 = 0.1 * jax.random.normal(ks[10], (COUT,), jnp.float32)
    v2 = 0.5 + jnp.abs(jax.random.normal(ks[11], (COUT,), jnp.float32))
    s2 = g2 / jnp.sqrt(v2 + BN_EPS)
    b2 = be2 - mu2 * s2

    ls = LS_INIT * jnp.ones((COUT,), jnp.float32)                 # LayerScale init

    return (w1, s1, b1, wse1, wse2, w2, s2, b2, ls)


if __name__ == "__main__":
    key = jax.random.PRNGKey(0)
    kx, kp = jax.random.split(key)
    x = jax.random.normal(kx, (N, CIN, H, W), jnp.float32)
    params = make_params(kp)

    out = jax.block_until_ready(fused_inverted_bottleneck(x, params))
    ref = reference_forward(x, params)

    assert out.shape == (N, COUT, H, W), out.shape
    max_err = float(jnp.max(jnp.abs(out - ref)))
    assert jnp.allclose(out, ref, rtol=2e-3, atol=1e-7), max_err
    print("KERNEL_OK")
</pallas_src>

<mosaic_0001>
module attributes {stable_mosaic.version = 11 : i64} {
  func.func @_fib_kernel(%arg0: memref<2x4x256xf32, #tpu.memory_space<vmem>>, %arg1: memref<8x128xf32, #tpu.memory_space<vmem>>, %arg2: memref<2x4x256xf32, #tpu.memory_space<vmem>>, %arg3: memref<4x768xf32, #tpu.memory_space<vmem>>) attributes {dimension_semantics = [], scalar_prefetch = 0 : i64, scratch_operands = 1 : i64, tpu.core_type = #tpu.core_type<tc>} {
    %c0 = arith.constant 0 : index
    %c0_0 = arith.constant 0 : index
    %0 = vector.load %arg1[%c0, %c0_0] : memref<8x128xf32, #tpu.memory_space<vmem>>, vector<8x36xf32>
    %c0_1 = arith.constant 0 : index
    %c36 = arith.constant 36 : index
    %1 = vector.load %arg1[%c0_1, %c36] : memref<8x128xf32, #tpu.memory_space<vmem>>, vector<4x8xf32>
    %c0_2 = arith.constant 0 : index
    %c44 = arith.constant 44 : index
    %2 = vector.load %arg1[%c0_2, %c44] : memref<8x128xf32, #tpu.memory_space<vmem>>, vector<8x2xf32>
    %c0_3 = arith.constant 0 : index
    %c46 = arith.constant 46 : index
    %3 = vector.load %arg1[%c0_3, %c46] : memref<8x128xf32, #tpu.memory_space<vmem>>, vector<8x2xf32>
    %c0_4 = arith.constant 0 : index
    %c48 = arith.constant 48 : index
    %4 = vector.load %arg1[%c0_4, %c48] : memref<8x128xf32, #tpu.memory_space<vmem>>, vector<8x1xf32>
    %c0_5 = arith.constant 0 : index
    %c49 = arith.constant 49 : index
    %5 = vector.load %arg1[%c0_5, %c49] : memref<8x128xf32, #tpu.memory_space<vmem>>, vector<4x1xf32>
    %c0_6 = arith.constant 0 : index
    %c50 = arith.constant 50 : index
    %6 = vector.load %arg1[%c0_6, %c50] : memref<8x128xf32, #tpu.memory_space<vmem>>, vector<4x1xf32>
    %7 = tpu.iota {dimensions = array<i32: 1>} : vector<1x512xi32>
    %c15_i32 = arith.constant 15 : i32
    %8 = vector.broadcast %c15_i32 : i32 to vector<1x512xi32>
    %9 = arith.andi %7, %8 : vector<1x512xi32>
    %c4_i32 = arith.constant 4 : i32
    %10 = vector.broadcast %c4_i32 : i32 to vector<1x512xi32>
    %11 = arith.shrsi %7, %10 : vector<1x512xi32>
    %c15_i32_7 = arith.constant 15 : i32
    %12 = vector.broadcast %c15_i32_7 : i32 to vector<1x512xi32>
    %13 = arith.andi %11, %12 : vector<1x512xi32>
    %c1_i32 = arith.constant 1 : i32
    %14 = vector.broadcast %c1_i32 : i32 to vector<1x512xi32>
    %15 = arith.cmpi sge, %9, %14 : vector<1x512xi32>
    %cst = arith.constant 1.000000e+00 : f32
    %cst_8 = arith.constant 0.000000e+00 : f32
    %16 = vector.broadcast %cst : f32 to vector<1x512xf32>
    %17 = vector.broadcast %cst_8 : f32 to vector<1x512xf32>
    %18 = arith.select %15, %16, %17 : vector<1x512xi1>, vector<1x512xf32>
    %c14_i32 = arith.constant 14 : i32
    %19 = vector.broadcast %c14_i32 : i32 to vector<1x512xi32>
    %20 = arith.cmpi sle, %9, %19 : vector<1x512xi32>
    %cst_9 = arith.constant 1.000000e+00 : f32
    %cst_10 = arith.constant 0.000000e+00 : f32
    %21 = vector.broadcast %cst_9 : f32 to vector<1x512xf32>
    %22 = vector.broadcast %cst_10 : f32 to vector<1x512xf32>
    %23 = arith.select %20, %21, %22 : vector<1x512xi1>, vector<1x512xf32>
    %c1_i32_11 = arith.constant 1 : i32
    %24 = vector.broadcast %c1_i32_11 : i32 to vector<1x512xi32>
    %25 = arith.cmpi sge, %13, %24 : vector<1x512xi32>
    %cst_12 = arith.constant 1.000000e+00 : f32
    %cst_13 = arith.constant 0.000000e+00 : f32
    %26 = vector.broadcast %cst_12 : f32 to vector<1x512xf32>
    %27 = vector.broadcast %cst_13 : f32 to vector<1x512xf32>
    %28 = arith.select %25, %26, %27 : vector<1x512xi1>, vector<1x512xf32>
    %c14_i32_14 = arith.constant 14 : i32
    %29 = vector.broadcast %c14_i32_14 : i32 to vector<1x512xi32>
    %30 = arith.cmpi sle, %13, %29 : vector<1x512xi32>
    %cst_15 = arith.constant 1.000000e+00 : f32
    %cst_16 = arith.constant 0.000000e+00 : f32
    %31 = vector.broadcast %cst_15 : f32 to vector<1x512xf32>
    %32 = vector.broadcast %cst_16 : f32 to vector<1x512xf32>
    %33 = arith.select %30, %31, %32 : vector<1x512xi1>, vector<1x512xf32>
    %c256_i32 = arith.constant 256 : i32
    %34 = vector.broadcast %c256_i32 : i32 to vector<1x512xi32>
    %35 = arith.cmpi slt, %7, %34 : vector<1x512xi32>
    %cst_17 = arith.constant 1.000000e+00 : f32
    %cst_18 = arith.constant 0.000000e+00 : f32
    %36 = vector.broadcast %cst_17 : f32 to vector<1x512xf32>
    %37 = vector.broadcast %cst_18 : f32 to vector<1x512xf32>
    %38 = arith.select %35, %36, %37 : vector<1x512xi1>, vector<1x512xf32>
    %c0_19 = arith.constant 0 : index
    %c0_20 = arith.constant 0 : index
    %c0_21 = arith.constant 0 : index
    %39 = vector.load %arg0[%c0_19, %c0_20, %c0_21] : memref<2x4x256xf32, #tpu.memory_space<vmem>>, vector<1x4x256xf32>
    %40 = vector.shape_cast %39 : vector<1x4x256xf32> to vector<4x256xf32>
    %c1 = arith.constant 1 : index
    %c0_22 = arith.constant 0 : index
    %c0_23 = arith.constant 0 : index
    %41 = vector.load %arg0[%c1, %c0_22, %c0_23] : memref<2x4x256xf32, #tpu.memory_space<vmem>>, vector<1x4x256xf32>
    %42 = vector.shape_cast %41 : vector<1x4x256xf32> to vector<4x256xf32>
    %cst_24 = arith.constant 0.000000e+00 : f32
    %43 = vector.broadcast %cst_24 : f32 to vector<4x128xf32>
    %c0_25 = arith.constant 0 : index
    %c0_26 = arith.constant 0 : index
    %44 = vector.load %arg3[%c0_25, %c0_26] : memref<4x768xf32, #tpu.memory_space<vmem>>, vector<4x128xf32>
    tpu.vector_store %arg3[%c0_25, %c0_26], %43 {strides = array<i32>} : memref<4x768xf32, #tpu.memory_space<vmem>>, vector<4x128xf32>,
    %cst_27 = arith.constant 0.000000e+00 : f32
    %45 = vector.broadcast %cst_27 : f32 to vector<4x128xf32>
    %c0_28 = arith.constant 0 : index
    %c640 = arith.constant 640 : index
    %46 = vector.load %arg3[%c0_28, %c640] : memref<4x768xf32, #tpu.memory_space<vmem>>, vector<4x128xf32>
    tpu.vector_store %arg3[%c0_28, %c640], %45 {strides = array<i32>} : memref<4x768xf32, #tpu.memory_space<vmem>>, vector<4x128xf32>,
    %c0_29 = arith.constant 0 : index
    %c128 = arith.constant 128 : index
    %47 = vector.load %arg3[%c0_29, %c128] : memref<4x768xf32, #tpu.memory_space<vmem>>, vector<4x256xf32>
    tpu.vector_store %arg3[%c0_29, %c128], %40 {strides = array<i32>} : memref<4x768xf32, #tpu.memory_space<vmem>>, vector<4x256xf32>,
    %c0_30 = arith.constant 0 : index
    %c384 = arith.constant 384 : index
    %48 = vector.load %arg3[%c0_30, %c384] : memref<4x768xf32, #tpu.memory_space<vmem>>, vector<4x256xf32>
    tpu.vector_store %arg3[%c0_30, %c384], %42 {strides = array<i32>} : memref<4x768xf32, #tpu.memory_space<vmem>>, vector<4x256xf32>,
    %c0_31 = arith.constant 0 : index
    %c111 = arith.constant 111 : index
    %49 = vector.load %arg3[%c0_31, %c111] : memref<4x768xf32, #tpu.memory_space<vmem>>, vector<4x512xf32>
    %50 = arith.mulf %28, %18 : vector<1x512xf32>
    %51 = vector.broadcast %50 : vector<1x512xf32> to vector<4x512xf32>
    %52 = arith.mulf %49, %51 : vector<4x512xf32>
    %c0_32 = arith.constant 0 : index
    %c112 = arith.constant 112 : index
    %53 = vector.load %arg3[%c0_32, %c112] : memref<4x768xf32, #tpu.memory_space<vmem>>, vector<4x512xf32>
    %54 = vector.broadcast %28 : vector<1x512xf32> to vector<4x512xf32>
    %55 = arith.mulf %53, %54 : vector<4x512xf32>
    %c0_33 = arith.constant 0 : index
    %c113 = arith.constant 113 : index
    %56 = vector.load %arg3[%c0_33, %c113] : memref<4x768xf32, #tpu.memory_space<vmem>>, vector<4x512xf32>
    %57 = arith.mulf %28, %23 : vector<1x512xf32>
    %58 = vector.broadcast %57 : vector<1x512xf32> to vector<4x512xf32>
    %59 = arith.mulf %56, %58 : vector<4x512xf32>
    %c0_34 = arith.constant 0 : index
    %c127 = arith.constant 127 : index
    %60 = vector.load %arg3[%c0_34, %c127] : memref<4x768xf32, #tpu.memory_space<vmem>>, vector<4x512xf32>
    %61 = vector.broadcast %18 : vector<1x512xf32> to vector<4x512xf32>
    %62 = arith.mulf %60, %61 : vector<4x512xf32>
    %c0_35 = arith.constant 0 : index
    %c128_36 = arith.constant 128 : index
    %63 = vector.load %arg3[%c0_35, %c128_36] : memref<4x768xf32, #tpu.memory_space<vmem>>, vector<4x512xf32>
    %c0_37 = arith.constant 0 : index
    %c129 = arith.constant 129 : index
    %64 = vector.load %arg3[%c0_37, %c129] : memref<4x768xf32, #tpu.memory_space<vmem>>, vector<4x512xf32>
    %65 = vector.broadcast %23 : vector<1x512xf32> to vector<4x512xf32>
    %66 = arith.mulf %64, %65 : vector<4x512xf32>
    %c0_38 = arith.constant 0 : index
    %c143 = arith.constant 143 : index
    %67 = vector.load %arg3[%c0_38, %c143] : memref<4x768xf32, #tpu.memory_space<vmem>>, vector<4x512xf32>
    %68 = arith.mulf %33, %18 : vector<1x512xf32>
    %69 = vector.broadcast %68 : vector<1x512xf32> to vector<4x512xf32>
    %70 = arith.mulf %67, %69 : vector<4x512xf32>
    %c0_39 = arith.constant 0 : index
    %c144 = arith.constant 144 : index
    %71 = vector.load %arg3[%c0_39, %c144] : memref<4x768xf32, #tpu.memory_space<vmem>>, vector<4x512xf32>
    %72 = vector.broadcast %33 : vector<1x512xf32> to vector<4x512xf32>
    %73 = arith.mulf %71, %72 : vector<4x512xf32>
    %c0_40 = arith.constant 0 : index
    %c145 = arith.constant 145 : index
    %74 = vector.load %arg3[%c0_40, %c145] : memref<4x768xf32, #tpu.memory_space<vmem>>, vector<4x512xf32>
    %75 = arith.mulf %33, %23 : vector<1x512xf32>
    %76 = vector.broadcast %75 : vector<1x512xf32> to vector<4x512xf32>
    %77 = arith.mulf %74, %76 : vector<4x512xf32>
    %78 = tpu.concatenate %52, %55, %59, %62, %63, %66, %70, %73, %77 in 0 : vector<4x512xf32>, vector<4x512xf32>, vector<4x512xf32>, vector<4x512xf32>, vector<4x512xf32>, vector<4x512xf32>, vector<4x512xf32>, vector<4x512xf32>, vector<4x512xf32> -> vector<36x512xf32>
    %cst_41 = arith.constant dense<0.000000e+00> : vector<8x512xf32>
    %79 = tpu.matmul %0, %78, %cst_41 {dimension_numbers = #tpu.dot_dimension_numbers<[1], [0], [0], [1], [0, 0, 1, 1], [], []>} : vector<8x36xf32>, vector<36x512xf32>, vector<8x512xf32> -> vector<8x512xf32>
    %80 = vector.broadcast %4 : vector<8x1xf32> to vector<8x512xf32>
    %81 = arith.addf %79, %80 : vector<8x512xf32>
    %cst_42 = arith.constant 3.000000e+00 : f32
    %82 = vector.broadcast %cst_42 : f32 to vector<8x512xf32>
    %83 = arith.addf %81, %82 : vector<8x512xf32>
    %cst_43 = arith.constant 0.000000e+00 : f32
    %cst_44 = arith.constant 6.000000e+00 : f32
    %84 = vector.broadcast %cst_43 : f32 to vector<8x512xf32>
    %85 = arith.maximumf %84, %83 : vector<8x512xf32>
    %86 = vector.broadcast %cst_44 : f32 to vector<8x512xf32>
    %87 = arith.minimumf %86, %85 : vector<8x512xf32>
    %88 = arith.mulf %81, %87 : vector<8x512xf32>
    %cst_45 = arith.constant 0.166666672 : f32
    %89 = vector.broadcast %cst_45 : f32 to vector<8x512xf32>
    %90 = arith.mulf %88, %89 : vector<8x512xf32>
    %91 = vector.extract_strided_slice %90 {offsets = [0, 0], sizes = [8, 256], strides = [1, 1]} : vector<8x512xf32> to vector<8x256xf32>
    %cst_46 = arith.constant dense<0.000000e+00> : vector<8xf32>
    %92 = vector.multi_reduction <add>, %91, %cst_46 [1] : vector<8x256xf32> to vector<8xf32>
    %93 = vector.shape_cast %92 : vector<8xf32> to vector<8x1xf32>
    %cst_47 = arith.constant 2.560000e+02 : f32
    %94 = vector.broadcast %cst_47 : f32 to vector<8x1xf32>
    %95 = arith.divf %93, %94 : vector<8x1xf32>
    %96 = vector.broadcast %95 : vector<8x1xf32> to vector<8x2xf32>
    %97 = arith.mulf %2, %96 : vector<8x2xf32>
    %cst_48 = arith.constant dense<0.000000e+00> : vector<2xf32>
    %98 = vector.multi_reduction <add>, %97, %cst_48 [0] : vector<8x2xf32> to vector<2xf32>
    %99 = vector.shape_cast %98 : vector<2xf32> to vector<1x2xf32>
    %cst_49 = arith.constant 0.000000e+00 : f32
    %100 = vector.broadcast %cst_49 : f32 to vector<1x2xf32>
    %101 = arith.maximumf %99, %100 : vector<1x2xf32>
    %102 = vector.broadcast %101 : vector<1x2xf32> to vector<8x2xf32>
    %103 = arith.mulf %3, %102 : vector<8x2xf32>
    %cst_50 = arith.constant dense<0.000000e+00> : vector<8xf32>
    %104 = vector.multi_reduction <add>, %103, %cst_50 [1] : vector<8x2xf32> to vector<8xf32>
    %105 = vector.shape_cast %104 : vector<8xf32> to vector<8x1xf32>
    %106 = arith.negf %105 : vector<8x1xf32>
    %107 = math.exp %106 : vector<8x1xf32>
    %cst_51 = arith.constant 1.000000e+00 : f32
    %108 = vector.broadcast %cst_51 : f32 to vector<8x1xf32>
    %109 = arith.addf %108, %107 : vector<8x1xf32>
    %110 = arith.divf %108, %109 : vector<8x1xf32>
    %111 = vector.extract_strided_slice %90 {offsets = [0, 256], sizes = [8, 256], strides = [1, 1]} : vector<8x512xf32> to vector<8x256xf32>
    %cst_52 = arith.constant dense<0.000000e+00> : vector<8xf32>
    %112 = vector.multi_reduction <add>, %111, %cst_52 [1] : vector<8x256xf32> to vector<8xf32>
    %113 = vector.shape_cast %112 : vector<8xf32> to vector<8x1xf32>
    %cst_53 = arith.constant 2.560000e+02 : f32
    %114 = vector.broadcast %cst_53 : f32 to vector<8x1xf32>
    %115 = arith.divf %113, %114 : vector<8x1xf32>
    %116 = vector.broadcast %115 : vector<8x1xf32> to vector<8x2xf32>
    %117 = arith.mulf %2, %116 : vector<8x2xf32>
    %cst_54 = arith.constant dense<0.000000e+00> : vector<2xf32>
    %118 = vector.multi_reduction <add>, %117, %cst_54 [0] : vector<8x2xf32> to vector<2xf32>
    %119 = vector.shape_cast %118 : vector<2xf32> to vector<1x2xf32>
    %cst_55 = arith.constant 0.000000e+00 : f32
    %120 = vector.broadcast %cst_55 : f32 to vector<1x2xf32>
    %121 = arith.maximumf %119, %120 : vector<1x2xf32>
    %122 = vector.broadcast %121 : vector<1x2xf32> to vector<8x2xf32>
    %123 = arith.mulf %3, %122 : vector<8x2xf32>
    %cst_56 = arith.constant dense<0.000000e+00> : vector<8xf32>
    %124 = vector.multi_reduction <add>, %123, %cst_56 [1] : vector<8x2xf32> to vector<8xf32>
    %125 = vector.shape_cast %124 : vector<8xf32> to vector<8x1xf32>
    %126 = arith.negf %125 : vector<8x1xf32>
    %127 = math.exp %126 : vector<8x1xf32>
    %cst_57 = arith.constant 1.000000e+00 : f32
    %128 = vector.broadcast %cst_57 : f32 to vector<8x1xf32>
    %129 = arith.addf %128, %127 : vector<8x1xf32>
    %130 = arith.divf %128, %129 : vector<8x1xf32>
    %131 = vector.broadcast %110 : vector<8x1xf32> to vector<8x512xf32>
    %132 = vector.broadcast %38 : vector<1x512xf32> to vector<8x512xf32>
    %133 = arith.mulf %131, %132 : vector<8x512xf32>
    %cst_58 = arith.constant 1.000000e+00 : f32
    %134 = vector.broadcast %cst_58 : f32 to vector<1x512xf32>
    %135 = arith.subf %134, %38 : vector<1x512xf32>
    %136 = vector.broadcast %130 : vector<8x1xf32> to vector<8x512xf32>
    %137 = vector.broadcast %135 : vector<1x512xf32> to vector<8x512xf32>
    %138 = arith.mulf %136, %137 : vector<8x512xf32>
    %139 = arith.addf %133, %138 : vector<8x512xf32>
    %140 = arith.mulf %90, %139 : vector<8x512xf32>
    %cst_59 = arith.constant dense<0.000000e+00> : vector<4x512xf32>
    %141 = tpu.matmul %1, %140, %cst_59 {dimension_numbers = #tpu.dot_dimension_numbers<[1], [0], [0], [1], [0, 0, 1, 1], [], []>} : vector<4x8xf32>, vector<8x512xf32>, vector<4x512xf32> -> vector<4x512xf32>
    %142 = vector.broadcast %5 : vector<4x1xf32> to vector<4x512xf32>
    %143 = arith.addf %141, %142 : vector<4x512xf32>
    %144 = vector.extract_strided_slice %143 {offsets = [0, 0], sizes = [4, 256], strides = [1, 1]} : vector<4x512xf32> to vector<4x256xf32>
    %145 = vector.broadcast %6 : vector<4x1xf32> to vector<4x256xf32>
    %146 = arith.mulf %145, %40 : vector<4x256xf32>
    %147 = arith.addf %144, %146 : vector<4x256xf32>
    %c0_60 = arith.constant 0 : index
    %c0_61 = arith.constant 0 : index
    %c0_62 = arith.constant 0 : index
    %148 = vector.load %arg2[%c0_60, %c0_61, %c0_62] : memref<2x4x256xf32, #tpu.memory_space<vmem>>, vector<1x4x256xf32>
    %149 = vector.shape_cast %148 : vector<1x4x256xf32> to vector<4x256xf32>
    %150 = vector.shape_cast %147 : vector<4x256xf32> to vector<1x4x256xf32>
    tpu.vector_store %arg2[%c0_60, %c0_61, %c0_62], %150 {strides = array<i32>} : memref<2x4x256xf32, #tpu.memory_space<vmem>>, vector<1x4x256xf32>,
    %151 = vector.extract_strided_slice %143 {offsets = [0, 256], sizes = [4, 256], strides = [1, 1]} : vector<4x512xf32> to vector<4x256xf32>
    %152 = vector.broadcast %6 : vector<4x1xf32> to vector<4x256xf32>
    %153 = arith.mulf %152, %42 : vector<4x256xf32>
    %154 = arith.addf %151, %153 : vector<4x256xf32>
    %c1_63 = arith.constant 1 : index
    %c0_64 = arith.constant 0 : index
    %c0_65 = arith.constant 0 : index
    %155 = vector.load %arg2[%c1_63, %c0_64, %c0_65] : memref<2x4x256xf32, #tpu.memory_space<vmem>>, vector<1x4x256xf32>
    %156 = vector.shape_cast %155 : vector<1x4x256xf32> to vector<4x256xf32>
    %157 = vector.shape_cast %154 : vector<4x256xf32> to vector<1x4x256xf32>
    tpu.vector_store %arg2[%c1_63, %c0_64, %c0_65], %157 {strides = array<i32>} : memref<2x4x256xf32, #tpu.memory_space<vmem>>, vector<1x4x256xf32>,
    return
  }
}

</mosaic_0001>

<bundles_post_ra>
// kernel: fused_inverted_bottleneck.1
= control target key start
LH: loop header
LB: loop body
LE: loop exit
PB: predicated region body
PF: predicated region fallthrough
CT: control target
= control target key end

     0   :  { %v13_v0 = vlaneseq  ;;  %v1253_v1 = vmov 0.0   ;;  %s1255_s13 = smov 127   ;;  %s1256_s14 = smov 112   ;;  %s1623_s0 = inlined_call_operand.vmem [shape: f32[2,4,256], index: 0, kind: input, shape index: {}]   ;;  %s1624_s1 = inlined_call_operand.vmem [shape: f32[8,128], index: 1, kind: input, shape index: {}]   ;;  %s1625_s2 = inlined_call_operand.vmem [shape: f32[2,4,256], index: 2, kind: output, shape index: {}]  }
   0x1   :  { %73 = vst [vmem:[#allocation2] sm:$0xf] %v1253_v1  ;;  %74 = vst [vmem:[#allocation2 + $0x14] sm:$0xf] %v1253_v1  ;;  %v1293_v2 = vld [vmem:[%s1623_s0 + $0x8] sm:$0xff]  ;;  %v1298_v3 = vld [vmem:[%s1623_s0] sm:$0xff]  ;;  %682 = vmatprep.mubr.f32.mxu0 %v1253_v1  ;;  %753 = vmatprep.mubr.f32.mxu1 %v1253_v1 }
   0x2   :  { %v14_v4 = vand.u32 127, %v13_v0  ;;  %76 = vst [vmem:[#allocation2 + $0xc] sm:$0xff] %v1293_v2  ;;  %75 = vst [vmem:[#allocation2 + $0x4] sm:$0xff] %v1298_v3  ;;  %s1254_s0 = smov 1   ;;  %s1257_s15 = smov 113  }
   0x3   :  { %s1258_s16 = smov 15   ;;  %s1259_s17 = smov 16  }
   0x4   :  { %v15_v5 = vadd.s32 128, %v14_v4  ;;  %v16_v6 = vadd.s32 256, %v14_v4  ;;  %v17_v7 = vadd.s32 384, %v14_v4  ;;  %v18_v8 = vand.u32 15, %v14_v4  ;;  %s1260_s18 = smov 17   ;;  %s1261_s19 = smov 111  }
   0x5   :  { %v22_v9 = vshra.s32 %v14_v4, 4  ;;  %s1262_s20 = smov 110   ;;  %s1263_s21 = smov 96  }
   0x6   :  { %v19_v10 = vand.u32 15, %v15_v5  ;;  %v20_v11 = vand.u32 15, %v16_v6  ;;  %v21_v12 = vand.u32 15, %v17_v7  ;;  %vm38_vm0 = vcmp.le.s32.totalorder %v18_v8, 14  ;;  %s1264_s22 = smov 95   ;;  %s1265_s23 = smov 94  }
   0x7   :  { %v1305_v13 = vsel %vm38_vm0, 1.0, %v1253_v1  ;;  %vm30_vm1 = vcmp.ge.s32.totalorder %v18_v8, 1  ;;  %v23_v14 = vshra.s32 %v15_v5, 4  ;;  %v24_v15 = vshra.s32 %v16_v6, 4  ;;  %s1266_s24 = smov 126   ;;  %s1268_s27 = smov 2  }
   0x8   :  { %vm39_vm2 = vcmp.le.s32.totalorder %v19_v10, 14  ;;  %vm40_vm3 = vcmp.le.s32.totalorder %v20_v11, 14  ;;  %vm41_vm4 = vcmp.le.s32.totalorder %v21_v12, 14  ;;  %vm31_vm5 = vcmp.ge.s32.totalorder %v19_v10, 1  ;;  %s1269_s28 = smov 82   ;;  %s1270_s3 = smov 92  }
   0x9   :  { %v1308_v16 = vsel %vm39_vm2, 1.0, %v1253_v1  ;;  %v1311_v17 = vsel %vm40_vm3, 1.0, %v1253_v1  ;;  %v1314_v18 = vsel %vm41_vm4, 1.0, %v1253_v1  ;;  %vm32_vm6 = vcmp.ge.s32.totalorder %v20_v11, 1 }
   0xa   :  { %v186_v19 = vcombine.low %v1305_v13, %v1308_v16  ;;  %v187_v20 = vcombine.low %v1311_v17, %v1314_v18  ;;  %vm33_vm7 = vcmp.ge.s32.totalorder %v21_v12, 1  ;;  %v1321_v21 = vsel %vm30_vm1, 1.0, %v1253_v1 }
   0xb   :  { %v1324_v22 = vsel %vm31_vm5, 1.0, %v1253_v1  ;;  %v1327_v23 = vsel %vm32_vm6, 1.0, %v1253_v1  ;;  %v1330_v24 = vsel %vm33_vm7, 1.0, %v1253_v1  ;;  %v25_v25 = vshra.s32 %v17_v7, 4 }
   0xc   :  { %v1103_v26 = vpack.i.bf16 %v187_v20, %v186_v19  ;;  %v159_v27 = vcombine.low %v1321_v21, %v1324_v22  ;;  %v160_v28 = vcombine.low %v1327_v23, %v1330_v24  ;;  %v26_v29 = vand.u32 15, %v22_v9 }
   0xd   :  { %v27_v30 = vand.u32 15, %v23_v14  ;;  %v28_v31 = vand.u32 15, %v24_v15  ;;  %v29_v32 = vand.u32 15, %v25_v25  ;;  %v1366_v10 = vcombine.high %v1293_v2, %v1293_v2 }
   0xe   :  { %1104 = vrot.lane.b32.xlu0 %v1103_v26, %s1254_s0  ;;  %v1098_v33 = vpack.i.bf16 %v160_v28, %v159_v27  ;;  %vm46_vm8 = vcmp.ge.s32.totalorder %v26_v29, 1  ;;  %vm54_vm9 = vcmp.le.s32.totalorder %v26_v29, 14  ;;  %v1371_v12 = vcombine.high %v1298_v3, %v1298_v3  ;;  %v1380_v27 = vld [vmem:[#allocation2] sm:$0xff]  ;;  %v1382_v29 = vld [vmem:[#allocation2 + $0x8] sm:$0xff] }
   0xf   :  { %vm47_vm10 = vcmp.ge.s32.totalorder %v27_v30, 1  ;;  %vm48_vm11 = vcmp.ge.s32.totalorder %v28_v31, 1  ;;  %vm49_vm12 = vcmp.ge.s32.totalorder %v29_v32, 1  ;;  %v50_v34 = vsel %vm46_vm8, 1.0, %v1253_v1 }
  0x10   :  { %1099 = vrot.lane.b32.xlu1 %v1098_v33, %s1255_s13  ;;  %v51_v35 = vsel %vm47_vm10, 1.0, %v1253_v1  ;;  %v52_v36 = vsel %vm48_vm11, 1.0, %v1253_v1  ;;  %v53_v37 = vsel %vm49_vm12, 1.0, %v1253_v1  ;;  %v129_v38 = vmul.f32 %v50_v34, %v1305_v13 }
  0x11   :  { %v111_v39 = vcombine.low %v50_v34, %v51_v35  ;;  %v112_v40 = vcombine.low %v52_v36, %v53_v37  ;;  %v130_v41 = vmul.f32 %v51_v35, %v1308_v16  ;;  %v131_v42 = vmul.f32 %v52_v36, %v1311_v17 }
  0x12   :  { %v132_v43 = vmul.f32 %v53_v37, %v1314_v18  ;;  %vm56_vm13 = vcmp.le.s32.totalorder %v28_v31, 14  ;;  %vm57_vm14 = vcmp.le.s32.totalorder %v29_v32, 14  ;;  %vm55_vm15 = vcmp.le.s32.totalorder %v27_v30, 14  ;;  %v1384_v30 = vld [vmem:[#allocation2 + $0x14] sm:$0xf] }
  0x13   :  { %v1108_v44 = vpack.i.bf16 %v112_v40, %v111_v39  ;;  %v60_v45 = vsel %vm56_vm13, 1.0, %v1253_v1  ;;  %v61_v46 = vsel %vm57_vm14, 1.0, %v1253_v1  ;;  %v137_v47 = vcombine.low %v129_v38, %v130_v41 }
  0x14   :  { %v138_v48 = vcombine.low %v131_v42, %v132_v43  ;;  %v58_v49 = vsel %vm54_vm9, 1.0, %v1253_v1  ;;  %v206_v50 = vmul.f32 %v60_v45, %v1327_v23  ;;  %v207_v51 = vmul.f32 %v61_v46, %v1330_v24 }
  0x15   :  { %1109 = vrot.lane.b32.xlu0 %v1108_v44, %s1256_s14  ;;  %v59_v52 = vsel %vm55_vm15, 1.0, %v1253_v1  ;;  %v204_v53 = vmul.f32 %v58_v49, %v1321_v21  ;;  %v235_v56 = vcombine.low %v60_v45, %v61_v46  ;;  %v252_v59 = vmul.f32 %v58_v49, %v1305_v13 }
  0x16   :  { %141 = vrot.lane.b32.xlu1 %v138_v48, %s1257_s15  ;;  %v205_v54 = vmul.f32 %v59_v52, %v1324_v22  ;;  %v234_v55 = vcombine.low %v58_v49, %v59_v52  ;;  %v213_v58 = vcombine.low %v206_v50, %v207_v51  ;;  %v253_v60 = vmul.f32 %v59_v52, %v1308_v16 }
  0x17   :  { %v254_v62 = vmul.f32 %v60_v45, %v1311_v17  ;;  %v255_v63 = vmul.f32 %v61_v46, %v1314_v18  ;;  %v80_v4 = vmul.f32 %v50_v34, %v1321_v21  ;;  %v81_v5 = vmul.f32 %v51_v35, %v1324_v22 }
  0x18   :  { %v212_v57 = vcombine.low %v204_v53, %v205_v54  ;;  %v1113_v61 = vpack.i.bf16 %v235_v56, %v234_v55  ;;  %v260_v0 = vcombine.low %v252_v59, %v253_v60  ;;  %v82_v7 = vmul.f32 %v52_v36, %v1327_v23  ;;  %v1377_v23 = vld [vmem:[#allocation2 + $0x10] sm:$0xf] }
  0x19   :  { %139 = vrot.lane.b32.xlu0 %v137_v47, %s1257_s15  ;;  %v261_v6 = vcombine.low %v254_v62, %v255_v63  ;;  %v83_v8 = vmul.f32 %v53_v37, %v1330_v24  ;;  %v88_v9 = vcombine.low %v80_v4, %v81_v5  ;;  %v1123_v13 = vpack.i.bf16 %v1366_v10, %v1293_v2 }
  0x1a   :  { %214 = vrot.lane.b32.xlu1 %v212_v57, %s1258_s16  ;;  %v1118_v14 = vpack.i.bf16 %v1371_v12, %v1298_v3  ;;  %vm98_vm0 = vcmask 1043456   ;;  %vm194_vm1 = vcmask 7168   ;;  %vm167_vm2 = vcmask 1039360  }
  0x1b   :  { %v89_v11 = vcombine.low %v82_v7, %v83_v8  ;;  %vm119_vm3 = vcmask 916480   ;;  %vm242_vm4 = vcmask 130048   ;;  %vm268_vm5 = vcmask 138240  }
  0x1c   :  { %vm145_vm6 = vcmask 924672   ;;  %vm220_vm7 = vcmask 121856   ;;  %vm96_vm8 = vcmask 908288   ;;  %vm395_vm9 = vcmask 900096  }
  0x1d   :  { %216 = vrot.lane.b32.xlu0 %v213_v58, %s1258_s16  ;;  %vm446_vm10 = vcmask 777216   ;;  %vm324_vm11 = vcmask 1031168   ;;  %vm420_vm12 = vcmask 785408   ;;  %vm471_vm13 = vcmask 769024  }
  0x1e   :  { %1114 = vrot.lane.b32.xlu1 %v1113_v61, %s1259_s17  ;;  %vm607_vm14 = vcmask 293888   ;;  %vm786_vm15 = vcmask 376160  }
  0x21   :  { %262 = vrot.lane.b32.xlu0 %v260_v0, %s1260_s18 }
  0x22   :  { %264 = vrot.lane.b32.xlu1 %v261_v6, %s1260_s18 }
  0x25   :  { %90 = vrot.lane.b32.xlu0 %v88_v9, %s1261_s19 }
  0x26   :  { %92 = vrot.lane.b32.xlu1 %v89_v11, %s1261_s19 }
  0x29   :  { %1124 = vrot.lane.b32.xlu0 %v1123_v13, %s1261_s19 }
  0x2a   :  { %1119 = vrot.lane.b32.xlu1 %v1118_v14, %s1261_s19 }
  0x80   :  { %v1105_v15 = vpop.permute.xlu0 %1104 }
  0x81   :  { %v1107_v16 = vunpack.i.h.bf16 %v1105_v15  ;;  %v1106_v17 = vunpack.i.l.bf16 %v1105_v15 }
  0x82   :  { %v1100_v18 = vpop.permute.xlu1 %1099 }
  0x83   :  { %v193_v19 = vrot.slane %v1107_v16, 4  ;;  %v192_v20 = vrot.slane %v1106_v17, 4  ;;  %v1102_v21 = vunpack.i.h.bf16 %v1100_v18  ;;  %v1101_v22 = vunpack.i.l.bf16 %v1100_v18 }
  0x85   :  { %v196_v24 = vsel %vm98_vm0, %v192_v20, %v193_v19  ;;  %v166_v25 = vrot.slane %v1102_v21, 4  ;;  %v165_v26 = vrot.slane %v1101_v22, 4  ;;  %v195_v28 = vsel %vm194_vm1, %v192_v20, %v1106_v17 }
  0x86   :  { %v197_v31 = vsel %vm194_vm1, %v196_v24, %v1107_v16  ;;  %v203_v43 = vmul.f32 %v193_v19, %v1384_v30  ;;  %v201_v46 = vmul.f32 %v195_v28, %v1298_v3  ;;  %vm872_vm1 = vcmask 64512  }
  0x87   :  { %v168_v32 = vsel %vm167_vm2, %v165_v26, %v1101_v22  ;;  %v169_v33 = vsel %vm98_vm0, %v165_v26, %v166_v25  ;;  %v176_v34 = vmul.f32 %v166_v25, %v1377_v23  ;;  %v1110_v35 = vpop.permute.xlu0 %1109  ;;  %v202_v45 = vmul.f32 %v1293_v2, %v197_v31 }
  0x88   :  { %v170_v36 = vsel %vm167_vm2, %v169_v33, %v1102_v21  ;;  %v1112_v37 = vunpack.i.h.bf16 %v1110_v35  ;;  %v1111_v38 = vunpack.i.l.bf16 %v1110_v35  ;;  %v1390_v39 = vpop.permute.xlu1 %141  ;;  %v174_v40 = vmul.f32 %v168_v32, %v1380_v27 }
  0x89   :  { %v175_v41 = vmul.f32 %v170_v36, %v1382_v29  ;;  %v339_v42 = vcombine.low %v176_v34, %v176_v34  ;;  %v384_v54 = vcombine.low %v203_v43, %v203_v43  ;;  %v383_v55 = vcombine.low %v202_v45, %v202_v45 }
  0x8a   :  { %v337_v44 = vcombine.low %v174_v40, %v174_v40  ;;  %v118_v47 = vrot.slane %v1112_v37, 4  ;;  %v117_v48 = vrot.slane %v1111_v38, 4  ;;  %v382_v59 = vcombine.low %v201_v46, %v201_v46 }
  0x8b   :  { %v140_v49 = vpop.permute.xlu0 %139  ;;  %v1128_v50 = vpack.i.bf16 %v339_v42, %v175_v41  ;;  %v338_v51 = vcombine.low %v175_v41, %v175_v41  ;;  %v1148_v4 = vpack.i.bf16 %v202_v45, %v383_v55  ;;  %v144_v15 = vrot.slane %v1390_v39, 4 }
  0x8c   :  { %340 = vrot.lane.b32.xlu0 %v337_v44, %s1256_s14  ;;  %v1398_v52 = vpop.permute.xlu1 %214  ;;  %v121_v56 = vsel %vm98_vm0, %v117_v48, %v118_v47  ;;  %v128_v57 = vmul.f32 %v118_v47, %v1377_v23  ;;  %v120_v5 = vsel %vm119_vm3, %v117_v48, %v1111_v38  ;;  %v1133_v7 = vpack.i.bf16 %v201_v46, %v382_v59 }
  0x8d   :  { %1129 = vrot.lane.b32.xlu1 %v1128_v50, %s1256_s14  ;;  %v1143_v53 = vpack.i.bf16 %v338_v51, %v174_v40  ;;  %v122_v63 = vsel %vm119_vm3, %v121_v56, %v1112_v37  ;;  %v143_v14 = vrot.slane %v140_v49, 4  ;;  %v126_v18 = vmul.f32 %v120_v5, %v1380_v27 }
  0x8e   :  { %v289_v8 = vcombine.low %v128_v57, %v128_v57  ;;  %v127_v16 = vmul.f32 %v122_v63, %v1382_v29  ;;  %v218_v25 = vrot.slane %v1398_v52, 4 }
  0x8f   :  { %v217_v58 = vpop.permute.xlu0 %216  ;;  %v147_v24 = vsel %vm98_vm0, %v143_v14, %v144_v15  ;;  %v287_v28 = vcombine.low %v126_v18, %v126_v18  ;;  %v146_v34 = vsel %vm145_vm6, %v143_v14, %v140_v49 }
  0x90   :  { %1144 = vrot.lane.b32.xlu0 %v1143_v53, %s1256_s14  ;;  %v1115_v60 = vpop.permute.xlu1 %1114  ;;  %v219_v0 = vrot.slane %v217_v58, 4  ;;  %v1138_v20 = vpack.i.bf16 %v289_v8, %v127_v16  ;;  %v148_v35 = vsel %vm145_vm6, %v147_v24, %v1390_v39  ;;  %v288_v38 = vcombine.low %v127_v16, %v127_v16 }
  0x91   :  { %393 = vrot.lane.b32.xlu1 %v384_v54, %s1262_s20  ;;  %v1117_v61 = vunpack.i.h.bf16 %v1115_v60  ;;  %v1116_v62 = vunpack.i.l.bf16 %v1115_v60  ;;  %v152_v41 = vmul.f32 %v146_v34, %v1380_v27  ;;  %v153_v42 = vmul.f32 %v148_v35, %v1382_v29 }
  0x92   :  { %v229_v9 = vmul.f32 %v219_v0, %v1384_v30  ;;  %v222_v36 = vsel %vm98_vm0, %v218_v25, %v219_v0  ;;  %v154_v39 = vmul.f32 %v144_v15, %v1377_v23  ;;  %v1158_v46 = vpack.i.bf16 %v288_v38, %v126_v18 }
  0x93   :  { %v241_v6 = vrot.slane %v1117_v61, 4  ;;  %v240_v11 = vrot.slane %v1116_v62, 4  ;;  %v263_v13 = vpop.permute.xlu0 %262  ;;  %v223_v44 = vsel %vm220_vm7, %v222_v36, %v217_v58  ;;  %v313_v48 = vcombine.high %v153_v42, %v153_v42 }
  0x94   :  { %1149 = vrot.lane.b32.xlu0 %v1148_v4, %s1262_s20  ;;  %v266_v19 = vrot.slane %v263_v13, 4  ;;  %v265_v45 = vpop.permute.xlu1 %264  ;;  %v221_v49 = vsel %vm220_vm7, %v218_v25, %v1398_v52  ;;  %v228_v51 = vmul.f32 %v1293_v2, %v223_v44  ;;  %v312_v54 = vcombine.high %v152_v41, %v152_v41 }
  0x95   :  { %1134 = vrot.lane.b32.xlu1 %v1133_v7, %s1262_s20  ;;  %v251_v17 = vmul.f32 %v241_v6, %v1384_v30  ;;  %v243_v21 = vsel %vm242_vm4, %v240_v11, %v1116_v62  ;;  %v244_v22 = vsel %vm98_vm0, %v240_v11, %v241_v6  ;;  %v267_v53 = vrot.slane %v265_v45, 4 }
  0x96   :  { %v245_v31 = vsel %vm242_vm4, %v244_v22, %v1117_v61  ;;  %v269_v32 = vsel %vm268_vm5, %v266_v19, %v263_v13  ;;  %v249_v33 = vmul.f32 %v243_v21, %v1298_v3  ;;  %v227_v55 = vmul.f32 %v221_v49, %v1298_v3 }
  0x97   :  { %v435_v26 = vcombine.low %v251_v17, %v251_v17  ;;  %v275_v37 = vmul.f32 %v269_v32, %v1298_v3  ;;  %v250_v40 = vmul.f32 %v1293_v2, %v245_v31  ;;  %v1178_v57 = vpack.i.bf16 %v154_v39, %v313_v48  ;;  %v91_v7 = vpop.permute.xlu0 %90 }
  0x98   :  { %418 = vrot.lane.b32.xlu0 %v229_v9, %s1263_s21  ;;  %v433_v43 = vcombine.low %v249_v33, %v249_v33  ;;  %v409_v58 = vcombine.high %v228_v51, %v228_v51  ;;  %v270_v59 = vsel %vm98_vm0, %v266_v19, %v267_v53  ;;  %v408_v60 = vcombine.high %v227_v55, %v227_v55  ;;  %v93_v6 = vpop.permute.xlu1 %92 }
  0x99   :  { %1139 = vrot.lane.b32.xlu1 %v1138_v20, %s1255_s13  ;;  %v434_v47 = vcombine.low %v250_v40, %v250_v40  ;;  %v1168_v61 = vpack.i.bf16 %v153_v42, %v312_v54  ;;  %v271_v62 = vsel %vm268_vm5, %v270_v59, %v265_v45  ;;  %v459_v4 = vcombine.high %v275_v37, %v275_v37 }
  0x9a   :  { %v1153_v50 = vpack.i.bf16 %v249_v33, %v433_v43  ;;  %v1183_v52 = vpack.i.bf16 %v409_v58, %v228_v51  ;;  %v1173_v63 = vpack.i.bf16 %v408_v60, %v227_v55  ;;  %v276_v0 = vmul.f32 %v1293_v2, %v271_v62 }
  0x9b   :  { %v1163_v56 = vpack.i.bf16 %v250_v40, %v434_v47  ;;  %v277_v5 = vmul.f32 %v267_v53, %v1384_v30  ;;  %v1125_v8 = vpop.permute.xlu0 %1124  ;;  %v95_v11 = vrot.slane %v93_v6, 4  ;;  %v94_v14 = vrot.slane %v91_v7, 4 }
  0x9c   :  { %290 = vrot.lane.b32.xlu0 %v287_v28, %s1255_s13  ;;  %v460_v3 = vcombine.high %v276_v0, %v276_v0  ;;  %v1445_v9 = vpop.permute.xlu1 %1119  ;;  %v1127_v17 = vunpack.i.h.bf16 %v1125_v8  ;;  %v1126_v18 = vunpack.i.l.bf16 %v1125_v8 }
  0x9d   :  { %444 = vrot.lane.b32.xlu1 %v435_v26, %s1264_s22  ;;  %v99_v30 = vsel %vm98_vm0, %v94_v14, %v95_v11  ;;  %v1122_v40 = vunpack.i.h.bf16 %v1445_v9  ;;  %v97_v54 = vsel %vm96_vm8, %v94_v14, %v91_v7 }
  0x9e   :  { %v100_v19 = vsel %vm96_vm8, %v99_v30, %v93_v6  ;;  %v373_v26 = vsel %vm96_vm8, %v1126_v18, %v1127_v17  ;;  %v104_v59 = vmul.f32 %v97_v54, %v1380_v27 }
  0x9f   :  { %v105_v25 = vmul.f32 %v100_v19, %v1382_v29 }
  0xa0   :  { %461 = vrot.lane.b32.xlu0 %v275_v37, %s1265_s23  ;;  %v106_v37 = vmul.f32 %v95_v11, %v1377_v23 }
  0xa1   :  { %314 = vrot.lane.b32.xlu1 %v152_v41, %s1266_s24  ;;  %v1121_v41 = vunpack.i.l.bf16 %v1445_v9  ;;  %v281_v44 = vcombine.high %v105_v25, %v105_v25 }
  0xa3   :  { %v371_v51 = vsel %vm96_vm8, %v1121_v41, %v1122_v40 }
  0xa4   :  { %1159 = vrot.lane.b32.xlu0 %v1158_v46, %s1255_s13 }
  0xa5   :  { %1154 = vrot.lane.b32.xlu1 %v1153_v50, %s1264_s22  ;;  %v372_v50 = vsel %vm96_vm8, %v1122_v40, %v1126_v18 }
  0xa8   :  { %1164 = vrot.lane.b32.xlu0 %v1163_v56, %s1264_s22 }
  0xa9   :  { %1179 = vrot.lane.b32.xlu1 %v1178_v57, %s1266_s24 }
  0xac   :  { %1169 = vrot.lane.b32.xlu0 %v1168_v61, %s1266_s24 }
  0xad   :  { %1184 = vrot.lane.b32.xlu1 %v1183_v52, %s1263_s21 }
  0xb0   :  { %1174 = vrot.lane.b32.xlu0 %v1173_v63, %s1263_s21 }
  0xb1   :  { %463 = vrot.lane.b32.xlu1 %v459_v4, %s1265_s23 }
  0xb4   :  { %465 = vrot.lane.b32.xlu0 %v276_v0, %s1265_s23  ;;  %v280_v0 = vcombine.high %v104_v59, %v104_v59 }
  0xb5   :  { %467 = vrot.lane.b32.xlu1 %v460_v3, %s1265_s23 }
  0xb8   :  { %469 = vrot.lane.b32.xlu0 %v277_v5, %s1265_s23 }
  0xfe   :  { %v1447_v2 = vpop.permute.xlu0 %340 }
  0xff   :  { %v1449_v13 = vpop.permute.xlu1 %1129 }
 0x100   :  { %v1132_v14 = vunpack.i.h.bf16 %v1449_v13  ;;  %v1131_v30 = vunpack.i.l.bf16 %v1449_v13 }
 0x102   :  { %v1451_v15 = vpop.permute.xlu0 %1144 }
 0x103   :  { %v394_v16 = vpop.permute.xlu1 %393  ;;  %v1146_v11 = vunpack.i.l.bf16 %v1451_v15 }
 0x106   :  { %v1150_v20 = vpop.permute.xlu0 %1149 }
 0x107   :  { %v1152_v21 = vunpack.i.h.bf16 %v1150_v20  ;;  %v1151_v22 = vunpack.i.l.bf16 %v1150_v20  ;;  %v1455_v24 = vpop.permute.xlu1 %1134 }
 0x108   :  { %v1137_v32 = vunpack.i.h.bf16 %v1455_v24  ;;  %v1136_v33 = vunpack.i.l.bf16 %v1455_v24  ;;  %v1561_v24 = vld [vmem:[%s1624_s1] sm:$0xff] }
 0x109   :  { %v399_v28 = vsel %vm395_vm9, %v1152_v21, %v394_v16  ;;  %v398_v31 = vsel %vm395_vm9, %v1151_v22, %v1152_v21  ;;  %v1147_v16 = vunpack.i.h.bf16 %v1451_v15 }
 0x10a   :  { %v1463_v34 = vpop.permute.xlu0 %418  ;;  %v489_v35 = vsel %vm98_vm0, %v373_v26, %v398_v31  ;;  %v490_v36 = vsel %vm98_vm0, %v1127_v17, %v399_v28  ;;  %v396_v39 = vsel %vm395_vm9, %v1136_v33, %v1137_v32  ;;  %v397_v45 = vsel %vm395_vm9, %v1137_v32, %v1151_v22 }
 0x10b   :  { %v1140_v38 = vpop.permute.xlu1 %1139  ;;  %v1198_v29 = vpack.i.bf16 %v490_v36, %v489_v35  ;;  %v487_v55 = vsel %vm98_vm0, %v371_v51, %v396_v39  ;;  %v488_v56 = vsel %vm98_vm0, %v372_v50, %v397_v45  ;;  %v350_v22 = vsel %vm119_vm3, %v1447_v2, %v1146_v11 }
 0x10c   :  { %v1142_v42 = vunpack.i.h.bf16 %v1140_v38  ;;  %v1141_v43 = vunpack.i.l.bf16 %v1140_v38  ;;  %v1193_v60 = vpack.i.bf16 %v488_v56, %v487_v55  ;;  %v352_v36 = vsel %vm119_vm3, %v1147_v16, %v1131_v30 }
 0x10d   :  { %1199 = vrot.lane.b32.xlu1 %v1198_v29, %s1260_s18  ;;  %v353_v55 = vsel %vm119_vm3, %v1131_v30, %v1132_v14 }
 0x10e   :  { %v303_v46 = vsel %vm167_vm2, %v1141_v43, %v1142_v42  ;;  %v291_v23 = vpop.permute.xlu0 %290  ;;  %v480_v47 = vsel %vm98_vm0, %v106_v37, %v1142_v42  ;;  %v351_v37 = vsel %vm119_vm3, %v1146_v11, %v1147_v16 }
 0x10f   :  { %v1477_v48 = vpop.permute.xlu1 %444  ;;  %v479_v49 = vsel %vm98_vm0, %v281_v44, %v303_v46 }
 0x110   :  { %v1188_v53 = vpack.i.bf16 %v480_v47, %v479_v49 }
 0x112   :  { %1189 = vrot.lane.b32.xlu0 %v1188_v53, %s1260_s18  ;;  %v1488_v57 = vpop.permute.xlu0 %461 }
 0x113   :  { %v315_v58 = vpop.permute.xlu1 %314 }
 0x116   :  { %1194 = vrot.lane.b32.xlu0 %v1193_v60, %s1260_s18  ;;  %v1160_v61 = vpop.permute.xlu0 %1159 }
 0x117   :  { %v1162_v52 = vunpack.i.h.bf16 %v1160_v61  ;;  %v1161_v62 = vunpack.i.l.bf16 %v1160_v61  ;;  %v1492_v63 = vpop.permute.xlu1 %1154 }
 0x118   :  { %v1156_v26 = vunpack.i.l.bf16 %v1492_v63 }
 0x119   :  { %v302_v4 = vsel %vm167_vm2, %v1162_v52, %v1141_v43  ;;  %v301_v3 = vsel %vm167_vm2, %v1161_v62, %v1162_v52  ;;  %v300_v18 = vsel %vm167_vm2, %v291_v23, %v1161_v62 }
 0x11a   :  { %v1165_v5 = vpop.permute.xlu0 %1164  ;;  %v477_v6 = vsel %vm98_vm0, %v280_v0, %v301_v3  ;;  %v478_v7 = vsel %vm98_vm0, %v105_v25, %v302_v4  ;;  %v1157_v25 = vunpack.i.h.bf16 %v1492_v63  ;;  %v476_v2 = vsel %vm98_vm0, %v104_v59, %v300_v18 }
 0x11b   :  { %v1180_v8 = vpop.permute.xlu1 %1179  ;;  %v1203_v27 = vpack.i.bf16 %v478_v7, %v477_v6  ;;  %v1166_v28 = vunpack.i.l.bf16 %v1165_v5  ;;  %v1167_v56 = vunpack.i.h.bf16 %v1165_v5 }
 0x11c   :  { %v1181_v19 = vunpack.i.l.bf16 %v1180_v8  ;;  %v1182_v32 = vunpack.i.h.bf16 %v1180_v8  ;;  %v447_v39 = vsel %vm446_vm10, %v1156_v26, %v1157_v25 }
 0x11d   :  { %1204 = vrot.lane.b32.xlu1 %v1203_v27, %s1260_s18  ;;  %v448_v45 = vsel %vm446_vm10, %v1157_v25, %v1166_v28  ;;  %v450_v0 = vsel %vm446_vm10, %v1167_v56, %v1477_v48  ;;  %v449_v4 = vsel %vm446_vm10, %v1166_v28, %v1167_v56  ;;  %v486_v48 = vsel %vm98_vm0, %v1121_v41, %v1136_v33 }
 0x11e   :  { %v1170_v17 = vpop.permute.xlu0 %1169  ;;  %v328_v47 = vsel %vm324_vm11, %v1181_v19, %v1182_v32  ;;  %v485_v61 = vsel %vm98_vm0, %v1182_v32, %v1132_v14  ;;  %v1267_v14 = vmov 48  }
 0x11f   :  { %v1172_v20 = vunpack.i.h.bf16 %v1170_v17  ;;  %v1171_v21 = vunpack.i.l.bf16 %v1170_v17  ;;  %v1185_v31 = vpop.permute.xlu1 %1184  ;;  %v484_v60 = vsel %vm98_vm0, %v328_v47, %v353_v55  ;;  %1238 = vset.pattern.permute.xlu0 %v1267_v14 }
 0x120   :  { %v1186_v40 = vunpack.i.l.bf16 %v1185_v31  ;;  %v1187_v49 = vunpack.i.h.bf16 %v1185_v31  ;;  %v1223_v3 = vpack.i.bf16 %v485_v61, %v484_v60 }
 0x121   :  { %v327_v13 = vsel %vm324_vm11, %v1172_v20, %v1181_v19  ;;  %v325_v15 = vsel %vm324_vm11, %v315_v58, %v1171_v21  ;;  %v326_v35 = vsel %vm324_vm11, %v1171_v21, %v1172_v20 }
 0x122   :  { %v1175_v38 = vpop.permute.xlu0 %1174  ;;  %v481_v29 = vsel %vm98_vm0, %v325_v15, %v350_v22  ;;  %v482_v46 = vsel %vm98_vm0, %v326_v35, %v351_v37  ;;  %v483_v23 = vsel %vm98_vm0, %v327_v13, %v352_v36  ;;  %v424_v52 = vsel %vm420_vm12, %v1187_v49, %v1463_v34 }
 0x123   :  { %v1177_v42 = vunpack.i.h.bf16 %v1175_v38  ;;  %v1176_v43 = vunpack.i.l.bf16 %v1175_v38  ;;  %v1208_v44 = vpack.i.bf16 %v481_v29, %v476_v2  ;;  %v1218_v59 = vpack.i.bf16 %v483_v23, %v482_v46  ;;  %v464_v63 = vpop.permute.xlu1 %463 }
 0x124   :  { %v423_v62 = vsel %vm420_vm12, %v1186_v40, %v1187_v49  ;;  %v472_v5 = vsel %vm471_vm13, %v1488_v57, %v464_v63  ;;  %v495_v7 = vsel %vm98_vm0, %v424_v52, %v450_v0 }
 0x125   :  { %v422_v50 = vsel %vm420_vm12, %v1177_v42, %v1186_v40  ;;  %v421_v51 = vsel %vm420_vm12, %v1176_v43, %v1177_v42  ;;  %1209 = vrot.lane.b32.xlu1 %v1208_v44, %s1260_s18  ;;  %v491_v6 = vsel %vm98_vm0, %v1176_v43, %v1156_v26  ;;  %v494_v34 = vsel %vm98_vm0, %v423_v62, %v449_v4 }
 0x126   :  { %v492_v53 = vsel %vm98_vm0, %v421_v51, %v447_v39  ;;  %v493_v54 = vsel %vm98_vm0, %v422_v50, %v448_v45  ;;  %v466_v8 = vpop.permute.xlu0 %465  ;;  %v1228_v27 = vpack.i.bf16 %v491_v6, %v486_v48  ;;  %v1233_v11 = vpack.i.bf16 %v495_v7, %v494_v34 }
 0x127   :  { %v1213_v58 = vpack.i.bf16 %v493_v54, %v492_v53  ;;  %v468_v30 = vpop.permute.xlu1 %467  ;;  %v473_v16 = vsel %vm471_vm13, %v464_v63, %v466_v8 }
 0x128   :  { %v474_v17 = vsel %vm471_vm13, %v466_v8, %v468_v30 }
 0x129   :  { %1214 = vrot.lane.b32.xlu0 %v1213_v58, %s1260_s18  ;;  %1219 = vrot.lane.b32.xlu1 %v1218_v59, %s1260_s18 }
 0x12a   :  { %v470_v18 = vpop.permute.xlu0 %469 }
 0x12b   :  { %v475_v9 = vsel %vm471_vm13, %v468_v30, %v470_v18 }
 0x12d   :  { %1224 = vrot.lane.b32.xlu0 %v1223_v3, %s1260_s18  ;;  %563 = vrot.lane.b32.xlu1 %v472_v5, %s1260_s18 }
 0x131   :  { %1229 = vrot.lane.b32.xlu0 %v1228_v27, %s1260_s18  ;;  %1234 = vrot.lane.b32.xlu1 %v1233_v11, %s1260_s18 }
 0x135   :  { %565 = vrot.lane.b32.xlu0 %v473_v16, %s1260_s18  ;;  %567 = vrot.lane.b32.xlu1 %v474_v17, %s1260_s18 }
 0x139   :  { %569 = vrot.lane.b32.xlu0 %v475_v9, %s1260_s18  ;;  %561 = vrot.lane.b32.xlu1 %v1488_v57, %s1260_s18 }
 0x13d   :  { %498 = vperm.xlu0 %1238, %v1561_v24  }
 0x17f   :  { %v1200_v33 = vpop.permute.xlu1 %1199 }
 0x180   :  { %v1202_v51 = vunpack.i.h.bf16 %v1200_v33  ;;  %v1201_v53 = vunpack.i.l.bf16 %v1200_v33 }
 0x182   :  { %v582_v5 = vsel %vm268_vm5, %v1201_v53, %v1202_v51 }
 0x184   :  { %v1190_v41 = vpop.permute.xlu0 %1189 }
 0x185   :  { %v1192_v38 = vunpack.i.h.bf16 %v1190_v41  ;;  %v1191_v2 = vunpack.i.l.bf16 %v1190_v41 }
 0x187   :  { %v574_v55 = vsel %vm268_vm5, %v1191_v2, %v1192_v38 }
 0x188   :  { %v1195_v20 = vpop.permute.xlu0 %1194 }
 0x189   :  { %v1197_v28 = vunpack.i.h.bf16 %v1195_v20  ;;  %v1196_v31 = vunpack.i.l.bf16 %v1195_v20 }
 0x18b   :  { %v580_v50 = vsel %vm268_vm5, %v1196_v31, %v1197_v28  ;;  %v581_v6 = vsel %vm268_vm5, %v1197_v28, %v1201_v53 }
 0x18f   :  { %v1205_v19 = vpop.permute.xlu1 %1204 }
 0x190   :  { %v1207_v22 = vunpack.i.h.bf16 %v1205_v19  ;;  %v1206_v25 = vunpack.i.l.bf16 %v1205_v19 }
 0x192   :  { %v572_v29 = vsel %vm268_vm5, %v1206_v25, %v1207_v22  ;;  %v573_v58 = vsel %vm268_vm5, %v1207_v22, %v1191_v2 }
 0x197   :  { %v1210_v21 = vpop.permute.xlu1 %1209 }
 0x198   :  { %v1211_v26 = vunpack.i.l.bf16 %v1210_v21  ;;  %v1212_v32 = vunpack.i.h.bf16 %v1210_v21 }
 0x19a   :  { %v571_v42 = vsel %vm268_vm5, %v1211_v26, %v1206_v25 }
 0x19b   :  { %v1215_v13 = vpop.permute.xlu0 %1214  ;;  %v1220_v57 = vpop.permute.xlu1 %1219 }
 0x19c   :  { %v1217_v15 = vunpack.i.h.bf16 %v1215_v13  ;;  %v1216_v35 = vunpack.i.l.bf16 %v1215_v13  ;;  %v1222_v36 = vunpack.i.h.bf16 %v1220_v57  ;;  %v1221_v37 = vunpack.i.l.bf16 %v1220_v57 }
 0x19e   :  { %v576_v40 = vsel %vm268_vm5, %v1221_v37, %v1222_v36  ;;  %v575_v43 = vsel %vm268_vm5, %v1212_v32, %v1221_v37  ;;  %v584_v44 = vsel %vm268_vm5, %v1216_v35, %v1217_v15 }
 0x19f   :  { %v1225_v39 = vpop.permute.xlu0 %1224  ;;  %v564_v45 = vpop.permute.xlu1 %563  ;;  %v1062_v46 = vpack.c.bf16 %v576_v40, %v572_v29  ;;  %v1064_v23 = vpack.c.bf16 %v575_v43, %v571_v42  ;;  %v1066_v54 = vpack.c.bf16 %v584_v44, %v580_v50 }
 0x1a0   :  { %v1227_v47 = vunpack.i.h.bf16 %v1225_v39  ;;  %v1226_v49 = vunpack.i.l.bf16 %v1225_v39 }
 0x1a1   :  { %1063 = vmatprep.subr.bf16.mxu0 %v1062_v46 }
 0x1a2   :  { %1065 = vmatpush1.bf16.msra.mxu0 %v1064_v23  ;;  %v578_v56 = vsel %vm268_vm5, %v1226_v49, %v1227_v47  ;;  %v577_v59 = vsel %vm268_vm5, %v1222_v36, %v1226_v49 }
 0x1a3   :  { %v1230_v60 = vpop.permute.xlu0 %1229  ;;  %v1235_v61 = vpop.permute.xlu1 %1234  ;;  %1067 = vmatprep.subr.bf16.mxu0 %v1066_v54  ;;  %v1070_v52 = vpack.c.bf16 %v578_v56, %v574_v55  ;;  %v1072_v62 = vpack.c.bf16 %v577_v59, %v573_v58 }
 0x1a4   :  { %v1232_v63 = vunpack.i.h.bf16 %v1230_v60  ;;  %v1231_v0 = vunpack.i.l.bf16 %v1230_v60  ;;  %v1237_v4 = vunpack.i.h.bf16 %v1235_v61  ;;  %v1236_v3 = vunpack.i.l.bf16 %v1235_v61 }
 0x1a5   :  { %1071 = vmatprep.subr.bf16.mxu1 %v1070_v52 }
 0x1a6   :  { %1073 = vmatpush1.bf16.msra.mxu1 %v1072_v62  ;;  %v579_v34 = vsel %vm268_vm5, %v1231_v0, %v1196_v31  ;;  %v583_v7 = vsel %vm268_vm5, %v1232_v63, %v1216_v35  ;;  %v586_v48 = vsel %vm268_vm5, %v1236_v3, %v1237_v4  ;;  %v585_v8 = vsel %vm268_vm5, %v1217_v15, %v1236_v3 }
 0x1a7   :  { %v566_v27 = vpop.permute.xlu0 %565  ;;  %v568_v11 = vpop.permute.xlu1 %567  ;;  %v1068_v14 = vpack.c.bf16 %v583_v7, %v579_v34  ;;  %v1074_v30 = vpack.c.bf16 %v586_v48, %v582_v5  ;;  %v1076_v16 = vpack.c.bf16 %v585_v8, %v581_v6 }
 0x1a8   :  { %v588_v17 = vsel %vm268_vm5, %v564_v45, %v566_v27  ;;  %v589_v19 = vsel %vm268_vm5, %v566_v27, %v568_v11 }
 0x1a9   :  { %1069 = vmatpush1.bf16.msra.mxu0 %v1068_v14  ;;  %1075 = vmatprep.subr.bf16.mxu1 %v1074_v30 }
 0x1aa   :  { %1051 = vmatprep.subr.msk.mxu0 %vm98_vm0, %v588_v17  ;;  %1077 = vmatpush1.bf16.msra.mxu1 %v1076_v16 }
 0x1ab   :  { %v570_v18 = vpop.permute.xlu0 %569  ;;  %v562_v9 = vpop.permute.xlu1 %561 }
 0x1ac   :  { %v590_v33 = vsel %vm268_vm5, %v568_v11, %v570_v18  ;;  %v587_v41 = vsel %vm268_vm5, %v562_v9, %v564_v45 }
 0x1ad   :  { %1052 = vmatpush1.msk.msra.mxu0 %vm98_vm0, %v587_v41  ;;  %1054 = vmatprep.subr.msk.mxu1 %vm98_vm0, %v590_v33 }
 0x1ae   :  { %1053 = vmatmul.mubr.msk.f32.vlgmr.msra.gmra.mrb[0].mxu0 %vm607_vm14, %v1561_v24  ;;  %1055 = vmatpush1.msk.msra.mxu1 %vm98_vm0, %v589_v19  ;;  %vm804_vm0 = vcmask 15360  }
 0x1af   :  { %1056 = vmatmul.mubr.msk.f32.vlgmr.msra.gmra.mrb[0].mxu1 %vm607_vm14, %v1561_v24  ;;  %939 = vmatprep.mubr.f32.mxu0 %v1253_v1 }
 0x1b0   :  { %1010 = vmatprep.mubr.f32.mxu1 %v1253_v1 }
 0x1bc   :  { %v499_v20 = vpop.permute.xlu0 %498 }
 0x281   :  { %v684_v21 = vpop.f32.mrb[0].mxu0 }
 0x282   :  { %v685_v22 = vadd.f32 %v684_v21, %v499_v20  ;;  %v686_v25 = vpop.f32.mrb[1].mxu0  ;;  %v755_v26 = vpop.f32.mrb[0].mxu1  ;;  %v1271_v21 = vmov 49  }
 0x283   :  { %v687_v28 = vadd.f32 %v686_v25, %v499_v20  ;;  %v756_v31 = vadd.f32 %v755_v26, %v499_v20  ;;  %v757_v32 = vpop.f32.mrb[1].mxu1  ;;  %1239 = vset.pattern.permute.xlu1 %v1271_v21 }
 0x284   :  { %v760_v13 = vadd.f32 3.0, %v685_v22  ;;  %v758_v57 = vadd.f32 %v757_v32, %v499_v20  ;;  %v12_v20 = vld [vmem:[%s1624_s1] sm:$0xf] }
 0x285   :  { %v761_v15 = vadd.f32 3.0, %v687_v28  ;;  %v762_v35 = vadd.f32 3.0, %v756_v31 }
 0x286   :  { %v764_v36 = vmax.f32 %v760_v13, 0.0  ;;  %v763_v37 = vadd.f32 3.0, %v758_v57 }
 0x287   :  { %v765_v38 = vmax.f32 %v761_v15, 0.0  ;;  %v766_v2 = vmax.f32 %v762_v35, 0.0 }
 0x288   :  { %v768_v29 = vmin.f32 %v764_v36, 6.0  ;;  %v767_v40 = vmax.f32 %v763_v37, 0.0 }
 0x289   :  { %v769_v42 = vmin.f32 %v765_v38, 6.0  ;;  %v770_v1 = vmin.f32 %v766_v2, 6.0 }
 0x28a   :  { %v772_v43 = vmul.f32 %v768_v29, %v685_v22  ;;  %v771_v44 = vmin.f32 %v767_v40, 6.0  ;;  %v1272_v22 = vmov 50  }
 0x28b   :  { %v773_v39 = vmul.f32 %v769_v42, %v687_v28  ;;  %v774_v45 = vmul.f32 %v770_v1, %v756_v31  ;;  %1240 = vset.pattern.permute.xlu0 %v1272_v22 }
 0x28c   :  { %v1592_v46 = vmul.f32 0.16666667, %v772_v43  ;;  %v775_v23 = vmul.f32 %v771_v44, %v758_v57 }
 0x28d   :  { %v1594_v47 = vmul.f32 0.16666667, %v773_v39  ;;  %v1596_v49 = vmul.f32 0.16666667, %v774_v45  ;;  %v1251_v45 = vld [vmem:[#allocation2 + $0xc] sm:$0xff] }
 0x28e   :  { %v1598_v50 = vmul.f32 0.16666667, %v775_v23 }
 0x28f   :  { %v780_v51 = vadd.f32 %v1594_v47, %v1592_v46 }
 0x290   :  { %v814_v53 = vadd.f32 %v1598_v50, %v1596_v49 }
 0x291   :  { %781 = vadd.xlane.f32.xlu1 %v780_v51  ;;  %v1252_v51 = vld [vmem:[#allocation2 + $0x4] sm:$0xff] }
 0x292   :  { %815 = vadd.xlane.f32.xlu0 %v814_v53 }
 0x31e   :  { %v782_v54 = vpop.xlane.xlu1 %781 }
 0x31f   :  { %v784_v55 = vmul.f32 0.00390625, %v782_v54  ;;  %v816_v56 = vpop.xlane.xlu0 %815 }
 0x320   :  { %v817_v58 = vmul.f32 0.00390625, %v816_v56 }
 0x321   :  { %v785_v59 = vmul.f32 %v784_v55, %v1561_v24 }
 0x322   :  { %v818_v60 = vmul.f32 %v817_v58, %v1561_v24 }
 0x323   :  { %v787_v61 = vsel %vm786_vm15, %v785_v59, 0.0 }
 0x324   :  { %v788_v52 = vrot.slane %v787_v61, 4  ;;  %v819_v62 = vsel %vm786_vm15, %v818_v60, 0.0 }
 0x325   :  { %v820_v63 = vrot.slane %v819_v62, 4 }
 0x326   :  { %v789_v0 = vadd.f32 %v788_v52, %v787_v61 }
 0x327   :  { %v821_v4 = vadd.f32 %v820_v63, %v819_v62 }
 0x328   :  { %v790_v3 = vrot.slane %v789_v0, 2 }
 0x329   :  { %v822_v5 = vrot.slane %v821_v4, 2 }
 0x32a   :  { %v791_v6 = vadd.f32 %v790_v3, %v789_v0 }
 0x32b   :  { %v823_v34 = vadd.f32 %v822_v5, %v821_v4 }
 0x32c   :  { %v792_v7 = vrot.slane %v791_v6, 1 }
 0x32d   :  { %v824_v48 = vrot.slane %v823_v34, 1 }
 0x32e   :  { %v793_v8 = vadd.f32 %v792_v7, %v791_v6 }
 0x32f   :  { %v825_v27 = vadd.f32 %v824_v48, %v823_v34 }
 0x330   :  { %v794_v11 = vmax.f32 %v793_v8, 0.0 }
 0x331   :  { %v826_v14 = vmax.f32 %v825_v27, 0.0 }
 0x332   :  { %796 = vrot.lane.b32.xlu1 %v794_v11, %s1268_s27 }
 0x333   :  { %828 = vrot.lane.b32.xlu0 %v826_v14, %s1268_s27 }
 0x3a4   :  { %v797_v30 = vpop.permute.xlu1 %796 }
 0x3a5   :  { %v799_v16 = vmul.f32 %v797_v30, %v1561_v24  ;;  %v829_v17 = vpop.permute.xlu0 %828 }
 0x3a6   :  { %v831_v18 = vmul.f32 %v829_v17, %v1561_v24 }
 0x3a7   :  { %801 = vrot.lane.b32.xlu1 %v799_v16, %s1269_s28 }
 0x3ab   :  { %833 = vrot.lane.b32.xlu1 %v831_v18, %s1269_s28 }
 0x419   :  { %v802_v9 = vpop.permute.xlu1 %801 }
 0x41a   :  { %v805_v33 = vsel %vm804_vm0, %v802_v9, 0.0 }
 0x41b   :  { %806 = vadd.xlane.f32.xlu0 %v805_v33 }
 0x41d   :  { %v834_v41 = vpop.permute.xlu1 %833 }
 0x41e   :  { %v836_v19 = vsel %vm804_vm0, %v834_v41, 0.0 }
 0x41f   :  { %837 = vadd.xlane.f32.xlu1 %v836_v19 }
 0x430   :  { %867 = vperm.xlu1 %1239, %v12_v20  }
 0x431   :  { %870 = vrot.lane.b32.xlu0 %v12_v20, %s1270_s3 }
 0x435   :  { %1018 = vperm.xlu0 %1240, %v12_v20  }
 0x4a8   :  { %v807_v24 = vpop.xlane.xlu0 %806 }
 0x4a9   :  { %v1057_v25 = vmul.f32 -1.442695, %v807_v24 }
 0x4ab   :  { %1243 = vpow2.f32 %v1057_v25 }
 0x4ac   :  { %v838_v26 = vpop.xlane.xlu1 %837  ;;  %v871_v42 = vpop.permute.xlu0 %870 }
 0x4ad   :  { %v1058_v28 = vmul.f32 -1.442695, %v838_v26 }
 0x4af   :  { %1245 = vpow2.f32 %v1058_v28 }
 0x4b0   :  { %v868_v39 = vpop.permute.xlu1 %867 }
 0x4b4   :  { %v1019_v44 = vpop.permute.xlu0 %1018 }
 0x4b5   :  { %v1244_v31 = vpop.eup %1243  ;;  %v1036_v23 = vmul.f32 %v1251_v45, %v1019_v44  ;;  %v1024_v53 = vmul.f32 %v1252_v51, %v1019_v44 }
 0x4b6   :  { %v811_v32 = vadd.f32 1.0, %v1244_v31 }
 0x4b8   :  { %1247 = vrcp.f32 %v811_v32 }
 0x4b9   :  { %v1246_v13 = vpop.eup %1245 }
 0x4ba   :  { %v842_v57 = vadd.f32 1.0, %v1246_v13 }
 0x4bc   :  { %1249 = vrcp.f32 %v842_v57 }
 0x4c2   :  { %v1248_v15 = vpop.eup %1247 }
 0x4c3   :  { %v847_v35 = vmul.f32 0.0, %v1248_v15 }
 0x4c6   :  { %v1250_v36 = vpop.eup %1249 }
 0x4c7   :  { %v859_v37 = vadd.f32 %v1250_v36, %v847_v35  ;;  %v853_v38 = vmul.f32 0.0, %v1250_v36 }
 0x4c9   :  { %v864_v2 = vmul.f32 %v859_v37, %v1598_v50  ;;  %v863_v29 = vmul.f32 %v859_v37, %v1596_v49  ;;  %v857_v40 = vadd.f32 %v1248_v15, %v853_v38  ;;  %v1037_v49 = vmul.f32 %v1019_v44, %v1366_v10 }
 0x4cb   :  { %946 = vmatprep.subr.mxu1 %v864_v2  ;;  %v862_v1 = vmul.f32 %v857_v40, %v1594_v47  ;;  %v861_v43 = vmul.f32 %v857_v40, %v1592_v46  ;;  %v1025_v47 = vmul.f32 %v1019_v44, %v1371_v12 }
 0x4cc   :  { %947 = vmatpush1.msra.mxu1 %v863_v29 }
 0x4cd   :  { %875 = vmatprep.subr.mxu0 %v862_v1  ;;  %1060 = vmatmul.mubr.msk.f32.vlgmr.msra.gmra.mrb[2].mxu1 %vm872_vm1, %v871_v42 }
 0x4ce   :  { %876 = vmatpush1.msra.mxu0 %v861_v43 }
 0x4cf   :  { %1059 = vmatmul.mubr.msk.f32.vlgmr.msra.gmra.mrb[2].mxu0 %vm872_vm1, %v871_v42 }
 0x5a0   :  { %v1012_v50 = vpop.f32.mrb[2].mxu1 }
 0x5a1   :  { %v1014_v54 = vpop.f32.mrb[3].mxu1  ;;  %v1013_v55 = vadd.f32 %v1012_v50, %v868_v39 }
 0x5a2   :  { %v941_v56 = vpop.f32.mrb[2].mxu0  ;;  %v1015_v46 = vadd.f32 %v1014_v54, %v868_v39 }
 0x5a3   :  { %v943_v58 = vpop.f32.mrb[3].mxu0  ;;  %v942_v59 = vadd.f32 %v941_v56, %v868_v39  ;;  %v1038_v60 = vadd.f32 %v1036_v23, %v1013_v55 }
 0x5a4   :  { %v944_v61 = vadd.f32 %v943_v58, %v868_v39  ;;  %v1039_v52 = vadd.f32 %v1037_v49, %v1015_v46 }
 0x5a5   :  { %v1026_v62 = vadd.f32 %v1024_v53, %v942_v59 }
 0x5a6   :  { %v1027_v63 = vadd.f32 %v1025_v47, %v944_v61  ;;  %v1042_v0 = vcombine.low %v1038_v60, %v1039_v52 }
 0x5a8   :  { %v1030_v4 = vcombine.low %v1026_v62, %v1027_v63  ;;  %1061 = vst [vmem:[%s1625_s2 + $0x8] sm:$0xff] %v1042_v0 }
 0x5aa   :  { %1032 = vst [vmem:[%s1625_s2] sm:$0xff] %v1030_v4 }

</bundles_post_ra>
